<compile_context>
chip_gen: v6e
topology: v6e:2x2x1
jax: 0.10.0
libtpu: 0.0.40
codegen_flags: <defaults>
</compile_context>

<pallas_src>
import functools
from math import sqrt

import jax
import jax.numpy as jnp
from jax import lax
from jax.experimental import pallas as pl
from jax.experimental.pallas import tpu as pltpu

_MIB = 1 << 20


# ---------------------------------------------------------------------------
# One-time hardware / feature probes (cached; NOT in the per-call hot path).
# ---------------------------------------------------------------------------
@functools.lru_cache(maxsize=None)
def _physical_vmem_bytes():
    try:
        return int(pltpu.get_tpu_info().vmem_capacity_bytes)
    except Exception:
        return 64 * _MIB          # conservative fallback (v7x per-core VMEM)


def _vmem_limit(block_bytes):
    budget = int(0.85 * _physical_vmem_bytes())
    return int(min(max(block_bytes + 4 * _MIB, 16 * _MIB), budget))


@functools.lru_cache(maxsize=None)
def _single_buffer_mode():
    """Probe (once) whether this Pallas build accepts pl.Buffered(1)."""
    if not hasattr(pl, "Buffered"):
        return None

    def probe_kernel(x_ref, w_ref, kv_ref, o_ref):
        o_ref[...] = x_ref[...] + w_ref[...] + kv_ref[...]

    try:
        mode = pl.Buffered(1)
        fn = pl.pallas_call(
            probe_kernel,
            out_shape=jax.ShapeDtypeStruct((16, 128), jnp.float32),
            grid=(2,),
            in_specs=[
                pl.BlockSpec((8, 128), lambda i: (i, 0)),
                pl.BlockSpec((8, 128), lambda i: (0, 0), pipeline_mode=mode),
                pl.BlockSpec((8, 128), lambda i: (i, 0), pipeline_mode=mode),
            ],
            out_specs=pl.BlockSpec((8, 128), lambda i: (i, 0)),
        )
        jax.block_until_ready(
            fn(jnp.zeros((16, 128), jnp.float32),
               jnp.zeros((8, 128), jnp.float32),
               jnp.zeros((16, 128), jnp.float32)))
        return mode
    except Exception:
        return None


def _const_spec(shape, pipeline_mode):
    """BlockSpec for a grid-invariant (weight) operand."""
    index_map = lambda *_: (0,) * len(shape)
    if pipeline_mode is None:
        return pl.BlockSpec(shape, index_map)
    return pl.BlockSpec(shape, index_map, pipeline_mode=pipeline_mode)


def _pick_tq(l, return_attn):
    if l <= 128:
        return l
    if return_attn:
        return 128                       # keep the (1,H,TQ,Lp) attn block small
    big_vmem = _physical_vmem_bytes() >= 96 * _MIB   # v5e/v6e (128 MiB parts)
    if l >= 1024:
        return 512 if big_vmem else 256
    return 256 if big_vmem else 128


# ---------------------------------------------------------------------------
# Kernel 1: fused Q/K/V projection, batch*seq folded into the M dimension.
# ---------------------------------------------------------------------------
def _qkv_proj_kernel(x_ref, w_ref, b_ref, q_ref, k_ref, v_ref):
    y = jnp.dot(x_ref[...], w_ref[...], preferred_element_type=jnp.float32)
    y = y + b_ref[...]                               # bias kept in fp32
    d = q_ref.shape[-1]
    q_ref[...] = y[:, :d].astype(q_ref.dtype)
    k_ref[...] = y[:, d:2 * d].astype(k_ref.dtype)
    v_ref[...] = y[:, 2 * d:3 * d].astype(v_ref.dtype)


def _qkv_proj(x2d, w_qkv, b_qkv, *, out_dtype, weight_mode):
    bt, d = x2d.shape
    for cand in (512, 256, 128):
        if bt % cand == 0:
            tm = cand
            break
    else:
        tm = bt                                      # small case: one block
    c_item = jnp.dtype(x2d.dtype).itemsize
    q_item = jnp.dtype(out_dtype).itemsize
    wbuf = 1 if weight_mode is not None else 2
    block_bytes = (2 * tm * d * c_item + 6 * tm * d * q_item
                   + wbuf * (3 * d * d * c_item + 3 * d * 4))
    cost = pl.CostEstimate(
        flops=int(2 * bt * d * 3 * d),
        transcendentals=0,
        bytes_accessed=int(bt * d * c_item + 3 * bt * d * q_item
                           + 3 * d * d * c_item + 12 * d),
    )
    return pl.pallas_call(
        _qkv_proj_kernel,
        out_shape=tuple(jax.ShapeDtypeStruct((bt, d), out_dtype) for _ in range(3)),
        grid_spec=pltpu.PrefetchScalarGridSpec(
            num_scalar_prefetch=0,
            grid=(bt // tm,),
            in_specs=[
                pl.BlockSpec((tm, d), lambda i: (i, 0)),
                _const_spec((d, 3 * d), weight_mode),
                _const_spec((1, 3 * d), weight_mode),
            ],
            out_specs=tuple(pl.BlockSpec((tm, d), lambda i: (i, 0)) for _ in range(3)),
        ),
        compiler_params=pltpu.CompilerParams(
            dimension_semantics=("parallel",),
            vmem_limit_bytes=_vmem_limit(block_bytes),
        ),
        cost_estimate=cost,
    )(x2d, w_qkv, b_qkv)


# ---------------------------------------------------------------------------
# Kernel 2: per-(batch, query-tile) attention + output proj + LN + FFN + LN.
# ---------------------------------------------------------------------------
def _attn_ffn_kernel(x_ref, q_ref, k_ref, v_ref,
                     wo_ref, bo_ref, g1_ref, be1_ref,
                     w1_ref, b1_ref, w2_ref, b2_ref,
                     g2_ref, be2_ref,
                     o_ref, *maybe_attn,
                     n_heads, seq_len, eps, activation, approx_recip):
    attn_ref = maybe_attn[0] if maybe_attn else None

    x = x_ref[0].astype(jnp.float32)                 # (TQ, D) residual, fp32
    q = q_ref[0]                                     # (TQ, D) matmul dtype
    k = k_ref[0]                                     # (Lp, D)
    v = v_ref[0]                                     # (Lp, D)
    tq, d = q.shape
    lp = k.shape[0]
    dh = d // n_heads

    # Fold 1/sqrt(dh) into Q once (TQ*D mults instead of H*TQ*Lp).
    q = q * (1.0 / sqrt(dh))

    # Additive key-padding mask, built once outside the head loop.
    if lp > seq_len:                                 # static: only when padded
        key_bias = jnp.where(
            lax.broadcasted_iota(jnp.int32, (1, lp), 1) < seq_len,
            0.0, -1e30).astype(jnp.float32)
    else:
        key_bias = None

    # Per-head attention: only one (TQ, Lp) score matrix is live at a time and
    # head slices are contiguous lane ranges (no (L, H, dh) reshape relayouts).
    # NOTE: keep dh a multiple of 128 in real configs so these slices are
    # vreg-aligned (avoids per-head XLU relayouts).
    ctx_heads = []
    for hh in range(n_heads):
        sl = slice(hh * dh, (hh + 1) * dh)
        s = lax.dot_general(q[:, sl], k[:, sl], (((1,), (1,)), ((), ())),
                            preferred_element_type=jnp.float32)       # (TQ, Lp)
        if key_bias is not None:
            s = s + key_bias
        s = s - jnp.max(s, axis=-1, keepdims=True)
        p = jnp.exp(s)
        inv = pl.reciprocal(jnp.sum(p, axis=-1, keepdims=True), approx=approx_recip)
        a = p * inv
        ctx_heads.append(jnp.dot(a.astype(v.dtype), v[:, sl],
                                 preferred_element_type=jnp.float32))  # (TQ, dh)
        if attn_ref is not None:
            attn_ref[0, hh] = a.astype(attn_ref.dtype)

    # Output projection hoisted out of the head loop: one full-K matmul.
    ctx = jnp.concatenate(ctx_heads, axis=-1)                          # (TQ, D)
    new_x = jnp.dot(ctx.astype(wo_ref.dtype), wo_ref[...],
                    preferred_element_type=jnp.float32) + bo_ref[...]

    # residual + LayerNorm1 (fp32 stream; dropout == identity in eval mode)
    x1 = x + new_x
    mu1 = jnp.mean(x1, axis=-1, keepdims=True)
    var1 = jnp.mean((x1 - mu1) ** 2, axis=-1, keepdims=True)
    x1n = (x1 - mu1) * lax.rsqrt(var1 + eps) * g1_ref[...] + be1_ref[...]

    # position-wise FFN: Conv1d(kernel_size=1) == dense over the feature axis
    y = jnp.dot(x1n.astype(w1_ref.dtype), w1_ref[...],
                preferred_element_type=jnp.float32) + b1_ref[...]
    if activation == "relu":
        y = jnp.maximum(y, 0.0)
    else:
        y = jax.nn.gelu(y, approximate=False)   # exact erf, matches F.gelu
    y = jnp.dot(y.astype(w2_ref.dtype), w2_ref[...],
                preferred_element_type=jnp.float32) + b2_ref[...]

    # residual + LayerNorm2
    z = x1n + y
    mu2 = jnp.mean(z, axis=-1, keepdims=True)
    var2 = jnp.mean((z - mu2) ** 2, axis=-1, keepdims=True)
    out = (z - mu2) * lax.rsqrt(var2 + eps) * g2_ref[...] + be2_ref[...]

    o_ref[0] = out.astype(o_ref.dtype)


def _forward(x, params, *, n_heads, activation, compute_dtype, qkv_dtype,
             return_attn, attn_dtype, q_tile, eps, approx_softmax, weight_mode):
    b, l, d = x.shape
    f = params['w1'].shape[1]
    h = n_heads
    assert d % h == 0, "d_model must be divisible by n_heads"

    # --- query-row tiling --------------------------------------------------
    tq = q_tile if q_tile is not None else _pick_tq(l, return_attn)
    lp = -(-l // tq) * tq                            # padded sequence length
    nq = lp // tq
    if nq > 1:
        assert tq % 8 == 0, "query tile must be a multiple of 8 when tiling"

    cdt = jnp.dtype(compute_dtype)
    qdt = jnp.dtype(qkv_dtype) if qkv_dtype is not None else cdt
    f32 = jnp.float32
    approx = (cdt != f32) if approx_softmax is None else approx_softmax

    x_pad = x if lp == l else jnp.pad(x, ((0, 0), (0, lp - l), (0, 0)))
    x_res = x_pad.astype(f32)                        # residual stream stays fp32
    x_c = x_pad.astype(cdt)                          # matmul-operand copy

    # Fused QKV weights (one-time wrapper op; in a real model do this at init).
    w_qkv = jnp.concatenate([params['wq'], params['wk'], params['wv']], 1).astype(cdt)
    b_qkv = jnp.concatenate([params['bq'], params['bk'], params['bv']], 1).astype(f32)

    q2d, k2d, v2d = _qkv_proj(x_c.reshape(b * lp, d), w_qkv, b_qkv,
                              out_dtype=qdt, weight_mode=weight_mode)
    q3 = q2d.reshape(b, lp, d)
    k3 = k2d.reshape(b, lp, d)
    v3 = v2d.reshape(b, lp, d)

    wo = params['wo'].astype(cdt)
    w1 = params['w1'].astype(cdt)
    w2 = params['w2'].astype(cdt)
    bo = params['bo'].astype(f32)
    b1 = params['b1'].astype(f32)
    b2 = params['b2'].astype(f32)
    g1 = params['g1'].astype(f32)
    be1 = params['be1'].astype(f32)
    g2 = params['g2'].astype(f32)
    be2 = params['be2'].astype(f32)

    kernel = functools.partial(_attn_ffn_kernel, n_heads=h, seq_len=l,
                               eps=eps, activation=activation,
                               approx_recip=approx)

    # K/V change only with the batch index -> single-buffer them when possible.
    kv_im = lambda bi, qi: (bi, 0, 0)
    if weight_mode is None:
        kv_spec = pl.BlockSpec((1, lp, d), kv_im)
    else:
        kv_spec = pl.BlockSpec((1, lp, d), kv_im, pipeline_mode=weight_mode)

    in_specs = [
        pl.BlockSpec((1, tq, d), lambda bi, qi: (bi, qi, 0)),   # x residual
        pl.BlockSpec((1, tq, d), lambda bi, qi: (bi, qi, 0)),   # q tile
        kv_spec,                                                # k (full seq)
        kv_spec,                                                # v (full seq)
        _const_spec((d, d), weight_mode),    # wo
        _const_spec((1, d), weight_mode),    # bo
        _const_spec((1, d), weight_mode),    # g1
        _const_spec((1, d), weight_mode),    # be1
        _const_spec((d, f), weight_mode),    # w1
        _const_spec((1, f), weight_mode),    # b1
        _const_spec((f, d), weight_mode),    # w2
        _const_spec((1, d), weight_mode),    # b2
        _const_spec((1, d), weight_mode),    # g2
        _const_spec((1, d), weight_mode),    # be2
    ]
    if return_attn:
        out_shape = (jax.ShapeDtypeStruct((b, lp, d), f32),
                     jax.ShapeDtypeStruct((b, h, lp, lp), attn_dtype))
        out_specs = (pl.BlockSpec((1, tq, d), lambda bi, qi: (bi, qi, 0)),
                     pl.BlockSpec((1, h, tq, lp), lambda bi, qi: (bi, 0, qi, 0)))
    else:
        out_shape = jax.ShapeDtypeStruct((b, lp, d), f32)
        out_specs = pl.BlockSpec((1, tq, d), lambda bi, qi: (bi, qi, 0))

    c_item = cdt.itemsize
    q_item = qdt.itemsize
    a_item = jnp.dtype(attn_dtype).itemsize if return_attn else 0
    wbuf = 1 if weight_mode is not None else 2       # weight / K-V buffer count
    block_bytes = (
        2 * tq * d * 4                                # x residual tile (fp32)
        + 2 * tq * d * q_item                         # q tile
        + 2 * wbuf * lp * d * q_item                  # k + v
        + wbuf * ((d * d + 2 * d * f) * c_item + (6 * d + f) * 4)   # weights
        + 2 * tq * d * 4                              # out tile
        + 2 * h * tq * lp * a_item                    # attn-prob tile
        + 2 * tq * lp * 4 + tq * f * 4 + 4 * tq * d * 4             # temporaries
    )
    cost = pl.CostEstimate(
        flops=int(b * lp * (4 * lp * d + 2 * d * d + 4 * d * f)),
        transcendentals=int(b * h * lp * lp + 4 * b * lp),
        bytes_accessed=int(b * lp * d * 4                 # x residual read
                           + b * lp * d * q_item          # q read
                           + 2 * b * lp * d * q_item      # k, v once per batch
                           + (d * d + 2 * d * f) * c_item
                           + b * lp * d * 4               # out write
                           + b * h * lp * lp * a_item),   # attn write
    )

    res = pl.pallas_call(
        kernel,
        out_shape=out_shape,
        grid_spec=pltpu.PrefetchScalarGridSpec(
            num_scalar_prefetch=0,
            grid=(b, nq),
            in_specs=in_specs,
            out_specs=out_specs,
        ),
        compiler_params=pltpu.CompilerParams(
            dimension_semantics=("parallel", "parallel"),
            vmem_limit_bytes=_vmem_limit(block_bytes),
        ),
        cost_estimate=cost,
    )(x_res, q3, k3, v3, wo, bo, g1, be1, w1, b1, w2, b2, g2, be2)

    if return_attn:
        out_pad, attn_pad = res
        return out_pad[:, :l, :], attn_pad[:, :, :l, :l]
    return res[:, :l, :]


def encoder_layer(x, params, *, n_heads, activation='relu',
                  compute_dtype=jnp.float32, qkv_dtype=None,
                  return_attn=True, attn_dtype=jnp.bfloat16,
                  q_tile=None, eps=1e-5, approx_softmax=None):
    """EncoderLayer forward (eval mode: dropout == identity).

    attn_dtype defaults to bf16 (halves the (B,H,L,L) HBM writeback and its
    VMEM block); pass jnp.float32 for bit-accurate attention probabilities.
    qkv_dtype=bf16 halves the inter-kernel Q/K/V HBM round trip (v5e-friendly);
    accumulation, softmax and layernorm stay fp32 regardless.
    """
    return _forward(x, params, n_heads=n_heads, activation=activation,
                    compute_dtype=compute_dtype, qkv_dtype=qkv_dtype,
                    return_attn=return_attn, attn_dtype=attn_dtype,
                    q_tile=q_tile, eps=eps, approx_softmax=approx_softmax,
                    weight_mode=_single_buffer_mode())


def reference(x, p, n_heads):
    """Pure-JAX reference mirroring the PyTorch forward (eval mode)."""
    B, L, D = x.shape
    H = n_heads
    dh = D // H
    q = (x @ p['wq'] + p['bq']).reshape(B, L, H, dh)
    k = (x @ p['wk'] + p['bk']).reshape(B, L, H, dh)
    v = (x @ p['wv'] + p['bv']).reshape(B, L, H, dh)
    s = jnp.einsum('blhe,bkhe->bhlk', q, k) / sqrt(dh)
    a = jax.nn.softmax(s, axis=-1)
    ctx = jnp.einsum('bhlk,bkhe->blhe', a, v).reshape(B, L, D)
    new_x = ctx @ p['wo'] + p['bo']

    def ln(z, g, be):
        mu = z.mean(-1, keepdims=True)
        var = ((z - mu) ** 2).mean(-1, keepdims=True)
        return (z - mu) / jnp.sqrt(var + 1e-5) * g + be

    x1 = ln(x + new_x, p['g1'], p['be1'])
    y = jnp.maximum(x1 @ p['w1'] + p['b1'], 0.0)
    y = y @ p['w2'] + p['b2']
    return ln(x1 + y, p['g2'], p['be2']), a


if __name__ == "__main__":
    B, L, D, H = 2, 8, 32, 4
    F = 4 * D  # d_ff

    key = jax.random.PRNGKey(0)
    keys = jax.random.split(key, 16)

    def init(k, shape, fan_in):
        bound = 1.0 / sqrt(fan_in)
        return jax.random.uniform(k, shape, jnp.float32, -bound, bound)

    params = {
        'wq': init(keys[0], (D, D), D), 'bq': init(keys[1], (1, D), D),
        'wk': init(keys[2], (D, D), D), 'bk': init(keys[3], (1, D), D),
        'wv': init(keys[4], (D, D), D), 'bv': init(keys[5], (1, D), D),
        'wo': init(keys[6], (D, D), D), 'bo': init(keys[7], (1, D), D),
        'g1': jnp.ones((1, D), jnp.float32), 'be1': jnp.zeros((1, D), jnp.float32),
        'w1': init(keys[8], (D, F), D), 'b1': init(keys[9], (1, F), D),
        'w2': init(keys[10], (F, D), F), 'b2': init(keys[11], (1, D), F),
        'g2': jnp.ones((1, D), jnp.float32), 'be2': jnp.zeros((1, D), jnp.float32),
    }

    x = jax.random.normal(keys[12], (B, L, D), jnp.float32)
    out_ref, attn_ref_ = reference(x, params, H)

    # --- fp32 path (strict): fp32 attention probabilities -------------------
    out, attn = encoder_layer(x, params, n_heads=H, attn_dtype=jnp.float32)
    out = jax.block_until_ready(out)
    attn = jax.block_until_ready(attn)
    assert jnp.allclose(out, out_ref, atol=2e-4, rtol=2e-4)
    assert jnp.allclose(attn, attn_ref_, atol=2e-4, rtol=2e-4)

    # --- padded / multi-query-tile path (exercises key masking) -------------
    L2 = 12
    x2 = jax.random.normal(keys[13], (B, L2, D), jnp.float32)
    out2_ref, attn2_ref = reference(x2, params, H)
    out2, attn2 = encoder_layer(x2, params, n_heads=H, q_tile=8,
                                attn_dtype=jnp.float32)
    out2 = jax.block_until_ready(out2)
    assert jnp.allclose(out2, out2_ref, atol=2e-4, rtol=2e-4)
    assert jnp.allclose(attn2, attn2_ref, atol=2e-4, rtol=2e-4)

    # --- bf16 matmul path (fp32 residual/accum/LN; bf16 attn map; EUP recip) -
    out_bf, attn_bf = encoder_layer(x, params, n_heads=H,
                                    compute_dtype=jnp.bfloat16)
    out_bf = jax.block_until_ready(out_bf)
    assert jnp.allclose(out_bf, out_ref, atol=1e-1, rtol=1e-1)
    assert jnp.allclose(attn_bf.astype(jnp.float32), attn_ref_,
                        atol=5e-2, rtol=5e-2)

    # --- attention-map output skipped entirely (saves HBM traffic) ----------
    out_only = encoder_layer(x, params, n_heads=H, return_attn=False)
    out_only = jax.block_until_ready(out_only)
    assert jnp.allclose(out_only, out_ref, atol=2e-4, rtol=2e-4)

    # --- bf16 Q/K/V intermediates (halves inter-kernel HBM round trip) ------
    out_q = encoder_layer(x, params, n_heads=H, qkv_dtype=jnp.bfloat16,
                          return_attn=False)
    out_q = jax.block_until_ready(out_q)
    assert jnp.allclose(out_q, out_ref, atol=5e-2, rtol=5e-2)

    print("KERNEL_OK")
</pallas_src>

<mosaic_0001>
module attributes {stable_mosaic.version = 11 : i64} {
  func.func @probe_kernel(%arg0: i32, %arg1: memref<8x128xf32, #tpu.memory_space<vmem>>, %arg2: memref<8x128xf32, #tpu.memory_space<vmem>>, %arg3: memref<8x128xf32, #tpu.memory_space<vmem>>, %arg4: memref<8x128xf32, #tpu.memory_space<vmem>>) attributes {dimension_semantics = [#tpu.dimension_semantics<arbitrary>], iteration_bounds = array<i64: 2>, scalar_prefetch = 0 : i64, scratch_operands = 0 : i64, tpu.core_type = #tpu.core_type<tc>, window_params = [{transform_indices = @transform_0, window_bounds = array<i64: 8, 128>}, {pipeline_mode = #tpu.pipeline_mode<synchronous>, transform_indices = @transform_1, window_bounds = array<i64: 8, 128>}, {pipeline_mode = #tpu.pipeline_mode<synchronous>, transform_indices = @transform_2, window_bounds = array<i64: 8, 128>}, {transform_indices = @transform_3, window_bounds = array<i64: 8, 128>}]} {
    %c0 = arith.constant 0 : index
    %c0_0 = arith.constant 0 : index
    %0 = vector.load %arg1[%c0, %c0_0] : memref<8x128xf32, #tpu.memory_space<vmem>>, vector<8x128xf32>
    %c0_1 = arith.constant 0 : index
    %c0_2 = arith.constant 0 : index
    %1 = vector.load %arg2[%c0_1, %c0_2] : memref<8x128xf32, #tpu.memory_space<vmem>>, vector<8x128xf32>
    %2 = arith.addf %0, %1 : vector<8x128xf32>
    %c0_3 = arith.constant 0 : index
    %c0_4 = arith.constant 0 : index
    %3 = vector.load %arg3[%c0_3, %c0_4] : memref<8x128xf32, #tpu.memory_space<vmem>>, vector<8x128xf32>
    %4 = arith.addf %2, %3 : vector<8x128xf32>
    %c0_5 = arith.constant 0 : index
    %c0_6 = arith.constant 0 : index
    %5 = vector.load %arg4[%c0_5, %c0_6] : memref<8x128xf32, #tpu.memory_space<vmem>>, vector<8x128xf32>
    tpu.vector_store %arg4[%c0_5, %c0_6], %4 {strides = array<i32>} : memref<8x128xf32, #tpu.memory_space<vmem>>, vector<8x128xf32>,
    return
  }
  func.func @transform_0(%arg0: i32) -> (i32, i32) {
    %c0_i32 = arith.constant 0 : i32
    %c0_i32_0 = arith.constant 0 : i32
    return %arg0, %c0_i32 : i32, i32
  }
  func.func @transform_1(%arg0: i32) -> (i32, i32) {
    %c0_i32 = arith.constant 0 : i32
    %c0_i32_0 = arith.constant 0 : i32
    %c0_i32_1 = arith.constant 0 : i32
    return %c0_i32, %c0_i32_0 : i32, i32
  }
  func.func @transform_2(%arg0: i32) -> (i32, i32) {
    %c0_i32 = arith.constant 0 : i32
    %c0_i32_0 = arith.constant 0 : i32
    return %arg0, %c0_i32 : i32, i32
  }
  func.func @transform_3(%arg0: i32) -> (i32, i32) {
    %c0_i32 = arith.constant 0 : i32
    %c0_i32_0 = arith.constant 0 : i32
    return %arg0, %c0_i32 : i32, i32
  }
}

module attributes {stable_mosaic.version = 11 : i64} {
  func.func @_qkv_proj_kernel(%arg0: i32, %arg1: memref<16x32xf32, #tpu.memory_space<vmem>>, %arg2: memref<32x96xf32, #tpu.memory_space<vmem>>, %arg3: memref<1x96xf32, #tpu.memory_space<vmem>>, %arg4: memref<16x32xf32, #tpu.memory_space<vmem>>, %arg5: memref<16x32xf32, #tpu.memory_space<vmem>>, %arg6: memref<16x32xf32, #tpu.memory_space<vmem>>) attributes {dimension_semantics = [#tpu.dimension_semantics<parallel>], iteration_bounds = array<i64: 1>, scalar_prefetch = 0 : i64, scratch_operands = 0 : i64, tpu.core_type = #tpu.core_type<tc>, window_params = [{transform_indices = @transform_0, window_bounds = array<i64: 16, 32>}, {pipeline_mode = #tpu.pipeline_mode<synchronous>, transform_indices = @transform_1, window_bounds = array<i64: 32, 96>}, {pipeline_mode = #tpu.pipeline_mode<synchronous>, transform_indices = @transform_2, window_bounds = array<i64: 1, 96>}, {transform_indices = @transform_3, window_bounds = array<i64: 16, 32>}, {transform_indices = @transform_4, window_bounds = array<i64: 16, 32>}, {transform_indices = @transform_5, window_bounds = array<i64: 16, 32>}]} {
    %c0 = arith.constant 0 : index
    %c0_0 = arith.constant 0 : index
    %0 = vector.load %arg1[%c0, %c0_0] : memref<16x32xf32, #tpu.memory_space<vmem>>, vector<16x32xf32>
    %c0_1 = arith.constant 0 : index
    %c0_2 = arith.constant 0 : index
    %1 = vector.load %arg2[%c0_1, %c0_2] : memref<32x96xf32, #tpu.memory_space<vmem>>, vector<32x96xf32>
    %cst = arith.constant dense<0.000000e+00> : vector<16x96xf32>
    %2 = tpu.matmul %0, %1, %cst {dimension_numbers = #tpu.dot_dimension_numbers<[1], [0], [0], [1], [0, 0, 1, 1], [], []>} : vector<16x32xf32>, vector<32x96xf32>, vector<16x96xf32> -> vector<16x96xf32>
    %c0_3 = arith.constant 0 : index
    %c0_4 = arith.constant 0 : index
    %3 = vector.load %arg3[%c0_3, %c0_4] : memref<1x96xf32, #tpu.memory_space<vmem>>, vector<1x96xf32>
    %4 = vector.broadcast %3 : vector<1x96xf32> to vector<16x96xf32>
    %5 = arith.addf %2, %4 : vector<16x96xf32>
    %6 = vector.extract_strided_slice %5 {offsets = [0, 0], sizes = [16, 32], strides = [1, 1]} : vector<16x96xf32> to vector<16x32xf32>
    %c0_5 = arith.constant 0 : index
    %c0_6 = arith.constant 0 : index
    %7 = vector.load %arg4[%c0_5, %c0_6] : memref<16x32xf32, #tpu.memory_space<vmem>>, vector<16x32xf32>
    tpu.vector_store %arg4[%c0_5, %c0_6], %6 {strides = array<i32>} : memref<16x32xf32, #tpu.memory_space<vmem>>, vector<16x32xf32>,
    %8 = vector.extract_strided_slice %5 {offsets = [0, 32], sizes = [16, 32], strides = [1, 1]} : vector<16x96xf32> to vector<16x32xf32>
    %c0_7 = arith.constant 0 : index
    %c0_8 = arith.constant 0 : index
    %9 = vector.load %arg5[%c0_7, %c0_8] : memref<16x32xf32, #tpu.memory_space<vmem>>, vector<16x32xf32>
    tpu.vector_store %arg5[%c0_7, %c0_8], %8 {strides = array<i32>} : memref<16x32xf32, #tpu.memory_space<vmem>>, vector<16x32xf32>,
    %10 = vector.extract_strided_slice %5 {offsets = [0, 64], sizes = [16, 32], strides = [1, 1]} : vector<16x96xf32> to vector<16x32xf32>
    %c0_9 = arith.constant 0 : index
    %c0_10 = arith.constant 0 : index
    %11 = vector.load %arg6[%c0_9, %c0_10] : memref<16x32xf32, #tpu.memory_space<vmem>>, vector<16x32xf32>
    tpu.vector_store %arg6[%c0_9, %c0_10], %10 {strides = array<i32>} : memref<16x32xf32, #tpu.memory_space<vmem>>, vector<16x32xf32>,
    return
  }
  func.func @transform_0(%arg0: i32) -> (i32, i32) {
    %c0_i32 = arith.constant 0 : i32
    %c0_i32_0 = arith.constant 0 : i32
    return %arg0, %c0_i32 : i32, i32
  }
  func.func @transform_1(%arg0: i32) -> (i32, i32) {
    %c0_i32 = arith.constant 0 : i32
    %c0_i32_0 = arith.constant 0 : i32
    %c0_i32_1 = arith.constant 0 : i32
    return %c0_i32, %c0_i32_0 : i32, i32
  }
  func.func @transform_2(%arg0: i32) -> (i32, i32) {
    %c0_i32 = arith.constant 0 : i32
    %c0_i32_0 = arith.constant 0 : i32
    %c0_i32_1 = arith.constant 0 : i32
    return %c0_i32, %c0_i32_0 : i32, i32
  }
  func.func @transform_3(%arg0: i32) -> (i32, i32) {
    %c0_i32 = arith.constant 0 : i32
    %c0_i32_0 = arith.constant 0 : i32
    return %arg0, %c0_i32 : i32, i32
  }
  func.func @transform_4(%arg0: i32) -> (i32, i32) {
    %c0_i32 = arith.constant 0 : i32
    %c0_i32_0 = arith.constant 0 : i32
    return %arg0, %c0_i32 : i32, i32
  }
  func.func @transform_5(%arg0: i32) -> (i32, i32) {
    %c0_i32 = arith.constant 0 : i32
    %c0_i32_0 = arith.constant 0 : i32
    return %arg0, %c0_i32 : i32, i32
  }
}

</mosaic_0001>

<bundles_post_ra>
// kernel: tpu_custom_call.1
= control target key start
LH: loop header
LB: loop body
LE: loop exit
PB: predicated region body
PF: predicated region fallthrough
CT: control target
= control target key end

     0   :  { %8 = vsyncpa [#allocation3], 0  ;;  %s774_s0 = inlined_call_operand.hbm [shape: f32[16,128], index: 0, kind: input, shape index: {}]   ;;  %s775_s1 = inlined_call_operand.hbm [shape: f32[8,128], index: 1, kind: input, shape index: {}]   ;;  %s776_s2 = inlined_call_operand.hbm [shape: f32[16,128], index: 2, kind: input, shape index: {}]   ;;  %s777_s3 = inlined_call_operand.hbm [shape: f32[16,128], index: 3, kind: output, shape index: {}]  }
   0x1   :  { %10 = vsyncpa [#allocation3 + $0x1], 0 }
   0x2   :  { %11 = vsyncpa [#allocation6], 0 }
   0x3   :  { %12 = vsyncpa [#allocation4], 0 }
   0x4   :  { %14 = vsyncpa [#allocation4 + $0x1], 0  ;;  %s587_s12 = smov 0   ;;  %s589_s13 = smov 0  }
   0x5   :  { %s591_s14 = smov 0   ;;  %s593_s15 = smov 0  }
   0x6 LB: > { %s608_s16 = sadd.s32 4294967295, %s561_s15   ;;  %s329_s17 = sadd.s32 4294967294, %s561_s15   ;;  %s561_s15 = sphi %s593_s15, %s801_s15   ;;  %s557_s14 = sphi %s591_s14, %s800_s14   ;;  %s553_s13 = sphi %s589_s13, %s799_s13   ;;  %s549_s12 = sphi %s587_s12, %s798_s12  }
   0x7   : > { %p40_p0 = scmp.ne.s32.totalorder %s553_s13, %s549_s12  ;;  %p778_p1 = scmp.eq.s32.totalorder %s608_s16, 0 }
   0x8   : > { %p117_p3 = scmp.eq.s32.totalorder %s329_s17, 1  ;;  %p330_p5 = scmp.ge.s32.totalorder %s561_s15, 1 }
   0x9   : > { %p617_p4 = por %p778_p1, %p40_p0  ;;  %p124_p7 = scmp.lt.s32.totalorder %s561_s15, 3 }
   0xa   : > { %p622_p6 = por %p117_p3, %p40_p0  ;;  %s563_s21 = smov [#allocation5]  }
   0xb   : > { %s783_s18 = scalar_select %p617_p4, 1, 0 }
   0xc   : > { %s784_s19 = scalar_select %p622_p6, 1, 0 }
   0xd   : > { %p627_p8 = pnand %p330_p5, %p124_p7  ;;  %s137_s22 = sshll.u32 %s563_s21, 4  ;;  %s138_s22 = int_to_ptr.vmem [resolvable:$true] %s137_s22 }
   0xe   : > { %s332_s23 = sshll.u32 %s608_s16, 7  ;;  %s564_s29 = smov [#allocation7]  }
   0xf   : > { %s785_s20 = scalar_select %p627_p8, 1, 0 }
  0x10   : > { %p354_p10 = pneg %p627_p8  ;;  %s640_s26 = scalar_lea.hbm %s776_s2, %s332_s23 }
  0x11   : > { %s150_s30 = sshll.u32 %s564_s29, 4  ;;  %s418_s4 = scalar_lea.vmem %s138_s22, 128  ;;  %s151_s30 = int_to_ptr.vmem [resolvable:$true] %s150_s30 }
  0x12   : > { %p644_p11 = pnand %p354_p10, %p778_p1  ;;  %p650_p12 = pnand %p354_p10, %p617_p4 }
  0x13   : > { %p419_p0 = scmp.ne.s32.totalorder %s138_s22, %s418_s4  ;;  %p426_p7 = scmp.lt.s32.totalorder %s138_s22, %s138_s22 }
  0x14   : > { %p409_p13 = pneg %p644_p11  ;;  %p427_p9 = scmp.lt.s32.totalorder %s418_s4, %s418_s4 }
  0x16   : > { %p421_p3 = pnand %p419_p0, %p409_p13  ;;  %p428_p1 = por %p427_p9, %p426_p7 }
  0x18   : > { %p422_p5 = pneg %p421_p3 }
  0x1a   : > { %p429_p2 = pnand %p428_p1, %p422_p5 }
  0x1c   : > { %432 = shalt.err (!%p429_p2)
}
  0x1d   : > { %357 = dma.hbm_to_vmem [thread:$0]  (!%p644_p11), %s775_s1, 128, %s138_s22, [#allocation6]  }
  0x1e   : > { %s433_s7 = scalar_lea.hbm %s640_s26, 128  ;;  %p435_p13 = pneg %p650_p12 }
  0x1f   : > { %p434_p10 = scmp.ne.s32.totalorder %s640_s26, %s433_s7  ;;  %s438_s10 = scalar_lea.hbm %s776_s2, 256 }
  0x20   : > { %p439_p1 = scmp.lt.s32.totalorder %s640_s26, %s776_s2  ;;  %p440_p2 = scmp.lt.s32.totalorder %s438_s10, %s433_s7 }
  0x21   : > { %p436_p0 = pnand %p435_p13, %p434_p10 }
  0x22   : > { %p441_p9 = por %p440_p2, %p439_p1 }
  0x23   : > { %p437_p3 = pneg %p436_p0 }
  0x25   : > { %p442_p5 = pnand %p441_p9, %p437_p3 }
  0x27   : > { %445 = shalt.err (!%p442_p5)
}
  0x28   : > { %s446_s21 = scalar_lea.vmem %s151_s30, 128  ;;  %p454_p4 = scmp.lt.s32.totalorder %s151_s30, %s151_s30 }
  0x29   : > { %p447_p11 = scmp.ne.s32.totalorder %s151_s30, %s446_s21  ;;  %p455_p8 = scmp.lt.s32.totalorder %s446_s21, %s446_s21 }
  0x2b   : > { %p449_p7 = pnand %p447_p11, %p435_p13  ;;  %p456_p10 = por %p455_p8, %p454_p4 }
  0x2d   : > { %p450_p6 = pneg %p449_p7 }
  0x2f   : > { %p457_p0 = pnand %p456_p10, %p450_p6 }
  0x31   : > { %460 = shalt.err (!%p457_p0)
}
  0x32   : > { %360 = dma.hbm_to_vmem [thread:$0]  (!%p650_p12), %s640_s26, 128, %s151_s30, [#allocation6]  }
  0x33   : > { %s676_s22 = sadd.s32 1, %s561_s15   ;;  %s27_s24 = sadd.s32 1, %s557_s14 }
  0x34   : > { %s24_s25 = ssub.s32 %s561_s15, %s676_s22  ;;  %p34_p4 = scmp.ne.s32.totalorder %s557_s14, %s553_s13 }
  0x35   : > { %p25_p6 = scmp.eq.s32.totalorder %s24_s25, 0  ;;  %p35_p8 = scmp.eq.s32.totalorder %s561_s15, 0 }
  0x36   : > { %p788_p13 = scmp.eq.s32.totalorder %s608_s16, 1  ;;  %p370_p1 = scmp.lt.s32.totalorder %s561_s15, 2 }
  0x37   : > { %s692_s28 = scalar_select %p25_p6, %s557_s14, %s27_s24  }
  0x38   : > { %p686_p3 = por %p788_p13, %p34_p4  ;;  %p36_p2 = por %p35_p8, %p34_p4 }
  0x39   : > { %s161_s29 = sand.u32 1, %s557_s14   ;;  %s335_s26 = sshll.u32 %s561_s15, 7 }
  0x3a   : > { %s789_s27 = scalar_select %p686_p3, 1, 0 }
  0x3b   : > { %s334_s4 = sshll.u32 %s161_s29, 3  ;;  %s699_s6 = scalar_lea.hbm %s774_s0, %s335_s26 }
  0x3c   : > { %s165_s7 = scalar_lea.vmem [#allocation2], %s334_s4  ;;  %p701_p12 = pnand %p370_p1, %p36_p2 }
  0x3d   : > { %s172_s8 = sshll.u32 %s165_s7, 4  ;;  %s162_s10 = scalar_lea.sflag [#allocation3], %s161_s29  ;;  %s173_s8 = int_to_ptr.vmem [resolvable:$true] %s172_s8 }
  0x3e   : > { %s461_s11 = scalar_lea.hbm %s699_s6, 128  ;;  %p463_p5 = pneg %p701_p12 }
  0x3f   : > { %p462_p9 = scmp.ne.s32.totalorder %s699_s6, %s461_s11  ;;  %s466_s24 = scalar_lea.hbm %s774_s0, 256 }
  0x40   : > { %p467_p10 = scmp.lt.s32.totalorder %s699_s6, %s774_s0  ;;  %p468_p0 = scmp.lt.s32.totalorder %s466_s24, %s461_s11 }
  0x41   : > { %p464_p11 = pnand %p463_p5, %p462_p9 }
  0x42   : > { %p469_p4 = por %p468_p0, %p467_p10 }
  0x43   : > { %p465_p7 = pneg %p464_p11 }
  0x45   : > { %p470_p6 = pnand %p469_p4, %p465_p7 }
  0x47   : > { %473 = shalt.err (!%p470_p6)
}
  0x48   : > { %s474_s26 = scalar_lea.vmem %s173_s8, 128  ;;  %s565_s29 = smov [#allocation2]  }
  0x49   : > { %p475_p8 = scmp.ne.s32.totalorder %s173_s8, %s474_s26  ;;  %s479_s30 = sshll.u32 %s565_s29, 4  ;;  %s480_s30 = int_to_ptr.vmem [resolvable:$false] %s479_s30 }
  0x4a   : > { %s481_s5 = scalar_lea.vmem %s480_s30, 256  ;;  %p482_p2 = scmp.lt.s32.totalorder %s173_s8, %s480_s30 }
  0x4b   : > { %p477_p13 = pnand %p475_p8, %p463_p5  ;;  %p483_p9 = scmp.lt.s32.totalorder %s481_s5, %s474_s26 }
  0x4d   : > { %p478_p1 = pneg %p477_p13  ;;  %p484_p11 = por %p483_p9, %p482_p2 }
  0x4f   : > { %p485_p3 = pnand %p484_p11, %p478_p1 }
  0x51   : > { %488 = shalt.err (!%p485_p3)
}
  0x52   : > { %364 = dma.hbm_to_vmem [thread:$0]  (!%p701_p12), %s699_s6, 128, %s173_s8, %s162_s10  }
  0x53   : > { %p791_p7 = scmp.ne.s32.totalorder %s785_s20, 0 }
  0x54   : > { %s722_s7 = sand.u32 (!%p791_p7), 1, %s553_s13   ;;  %p792_p5 = scmp.ne.s32.totalorder (!%p791_p7), %s783_s18, 0 }
  0x55   : > { %181 = sbr.rel (%p791_p7) target bundleno = 121 (0x79), region = 32  ;;  %s337_s11 = sshll.u32 (!%p791_p7), %s722_s7, 3 }
  0x56   : > { %s184_s17 = scalar_lea.sflag (!%p791_p7), [#allocation3], %s722_s7  ;;  %s187_s21 = scalar_lea.vmem (!%p791_p7), [#allocation2], %s337_s11 }
  0x5a   : > { %532 = dma.done.wait (%p792_p5), %s184_s17, 128  }
  0x5b   : > { %534 = vsyncadd (%p792_p5), %s184_s17, 4294967168  ;;  %p793_p3 = scmp.eq.s32.totalorder %s608_s16, 0 }
  0x5d   : > { %536 = dma.done.wait (%p793_p3), [#allocation6], 128   ;;  %p794_p12 = pmov %p793_p3 }
  0x5f   : > { %538 = vsyncadd (%p794_p12), [#allocation6], 4294967168 }
  0x60   : > { %540 = dma.done.wait (%p792_p5), [#allocation6], 128  }
  0x61   : > { %542 = vsyncadd (%p792_p5), [#allocation6], 4294967168  ;;  %v218_v0 = vld [vmem:[%s187_s21] sm:$0xff]  ;;  %v219_v1 = vld [vmem:[#allocation5] sm:$0xff]  ;;  %s217_s20 = scalar_lea.vmem [#allocation8], %s337_s11  ;;  %s236_s10 = scalar_lea.hbm %s777_s3, %s332_s23 }
  0x62   : > { %v221_v2 = vld [vmem:[#allocation7] sm:$0xff]  ;;  %s238_s6 = sshll.u32 %s217_s20, 4  ;;  %v220_v3 = vadd.f32 %v219_v1, %v218_v0  ;;  %s225_s24 = scalar_lea.sflag [#allocation4], %s722_s7  ;;  %s239_s6 = int_to_ptr.vmem [resolvable:$true] %s238_s6 }
  0x63   : > { %s489_s18 = scalar_lea.vmem %s239_s6, 128  ;;  %p795_p0 = scmp.ne.s32.totalorder %s789_s27, 0 }
  0x64   : > { %v222_v4 = vadd.f32 %v221_v2, %v220_v3  ;;  %p490_p10 = scmp.ne.s32.totalorder %s239_s6, %s489_s18  ;;  %s566_s25 = smov [#allocation8]  }
  0x65   : > { %s493_s4 = sshll.u32 %s566_s25, 4  ;;  %s494_s4 = int_to_ptr.vmem [resolvable:$false] %s493_s4 }
  0x66   : > { %223 = vst [vmem:[%s217_s20] sm:$0xff] %v222_v4  ;;  %p491_p4 = pnand %p490_p10, %p795_p0  ;;  %s495_s26 = scalar_lea.vmem %s494_s4, 256 }
  0x67   : > { %p496_p8 = scmp.lt.s32.totalorder %s239_s6, %s494_s4  ;;  %p497_p13 = scmp.lt.s32.totalorder %s495_s26, %s489_s18 }
  0x68   : > { %p492_p6 = pneg %p491_p4 }
  0x69   : > { %p498_p1 = por %p497_p13, %p496_p8 }
  0x6b   : > { %p499_p2 = pnand %p498_p1, %p492_p6 }
  0x6d   : > { %502 = shalt.err (!%p499_p2)
}
  0x6e   : > { %s503_s16 = scalar_lea.hbm %s236_s10, 128  ;;  %s507_s30 = scalar_lea.hbm %s777_s3, 256 }
  0x6f   : > { %p504_p9 = scmp.ne.s32.totalorder %s236_s10, %s503_s16  ;;  %p508_p5 = scmp.lt.s32.totalorder %s236_s10, %s777_s3 }
  0x70   : > { %p509_p3 = scmp.lt.s32.totalorder %s507_s30, %s503_s16 }
  0x71   : > { %p505_p11 = pnand %p504_p9, %p795_p0 }
  0x72   : > { %p510_p12 = por %p509_p3, %p508_p5 }
  0x73   : > { %p506_p7 = pneg %p505_p11 }
  0x75   : > { %p511_p10 = pnand %p510_p12, %p506_p7 }
  0x77   : > { %514 = shalt.err (!%p511_p10)
}
  0x78   : > { %352 = dma.vmem_to_hbm [thread:$0]  (%p795_p0), %s239_s6, 128, %s236_s10, %s225_s24  }
  0x79 PF: > { %s250_s11 = sand.u32 1, %s549_s12   ;;  %p796_p4 = scmp.ne.s32.totalorder %s784_s19, 0 }
  0x7a   : > { %p797_p6 = scmp.ge.s32.totalorder %s561_s15, 2  ;;  %s251_s17 = scalar_lea.sflag [#allocation4], %s250_s11 }
  0x7c   : > { %p366_p8 = pnand %p797_p6, %p796_p4 }
  0x7e   : > { %p367_p13 = pneg %p366_p8 }
  0x80   : > { %544 = dma.done.wait (%p367_p13), %s251_s17, 128  }
  0x81   : > { %546 = vsyncadd (%p367_p13), %s251_s17, 4294967168  ;;  %p17_p1 = scmp.ge.s32.totalorder %s676_s22, 4   ;;  %s798_s12 = smov %s553_s13 }
  0x82   : > { %s799_s13 = smov %s557_s14  ;;  %s800_s14 = smov %s692_s28 }
  0x83   : > { %s801_s15 = smov %s676_s22  ;;  %19 = sbr.rel (!%p17_p1) target bundleno = 6 (0x6), region = 86 }
  0x88   :  { %256 = vsyncpa [#allocation3], 1 }
  0x89   :  { %258 = vsyncpa [#allocation3 + $0x1], 1 }
  0x8a   :  { %259 = vsyncpa [#allocation6], 1 }
  0x8b   :  { %260 = vsyncpa [#allocation4], 1 }
  0x8c   :  { %262 = vsyncpa [#allocation4 + $0x1], 1 }

// kernel: tpu_custom_call.1
= control target key start
LH: loop header
LB: loop body
LE: loop exit
PB: predicated region body
PF: predicated region fallthrough
CT: control target
= control target key end

     0   :  { %11 = vsyncpa [#allocation3], 0  ;;  %s428_s0 = inlined_call_operand.hbm [shape: f32[16,32], index: 0, kind: input, shape index: {}]   ;;  %s429_s1 = inlined_call_operand.hbm [shape: f32[32,96], index: 1, kind: input, shape index: {}]   ;;  %s430_s2 = inlined_call_operand.vmem [shape: f32[1,96], index: 2, kind: input, shape index: {}]   ;;  %s431_s3 = inlined_call_operand.hbm [shape: f32[16,32], index: 3, kind: output, shape index: {0}]   ;;  %s432_s4 = inlined_call_operand.hbm [shape: f32[16,32], index: 4, kind: output, shape index: {1}]   ;;  %s433_s5 = inlined_call_operand.hbm [shape: f32[16,32], index: 5, kind: output, shape index: {2}]  }
   0x1   :  { %12 = vsyncpa [#allocation6], 0 }
   0x2   :  { %13 = vsyncpa [#allocation4], 0 }
   0x3   :  { %14 = vsyncpa [#allocation9], 0  ;;  %s348_s18 = smov [#allocation2]  }
   0x4   :  { %s20_s19 = sshll.u32 %s348_s18, 4  ;;  %s21_s19 = int_to_ptr.vmem [resolvable:$true] %s20_s19 }
   0x5   :  { %s248_s20 = scalar_lea.vmem %s21_s19, 256  ;;  %p253_p1 = scmp.lt.s32.totalorder %s21_s19, %s21_s19 }
   0x6   :  { %p249_p0 = scmp.ne.s32.totalorder %s21_s19, %s248_s20  ;;  %p254_p2 = scmp.lt.s32.totalorder %s248_s20, %s248_s20 }
   0x8   :  { %p255_p3 = por %p254_p2, %p253_p1 }
   0xa   :  { %p256_p4 = pnand %p255_p3, %p249_p0 }
   0xc   :  { %259 = shalt.err (!%p256_p4)
}
   0xd   :  { %s349_s21 = smov 128   ;;  %s350_s22 = smov 8  }
   0xe   :  { %26 = dma.hbm_to_vmem [thread:$0]  %s428_s0, 256, %s21_s19, [#allocation3], %s349_s21, %s349_s21, %s350_s22  }
   0xf   :  { %s351_s25 = smov [#allocation5]  }
  0x10   :  { %s32_s26 = sshll.u32 %s351_s25, 4  ;;  %s33_s26 = int_to_ptr.vmem [resolvable:$true] %s32_s26 }
  0x11   :  { %s268_s27 = scalar_lea.vmem %s33_s26, 512  ;;  %p273_p6 = scmp.lt.s32.totalorder %s33_s26, %s33_s26 }
  0x12   :  { %p269_p5 = scmp.ne.s32.totalorder %s33_s26, %s268_s27  ;;  %p274_p7 = scmp.lt.s32.totalorder %s268_s27, %s268_s27 }
  0x14   :  { %p275_p8 = por %p274_p7, %p273_p6 }
  0x16   :  { %p276_p9 = pnand %p275_p8, %p269_p5 }
  0x18   :  { %279 = shalt.err (!%p276_p9)
}
  0x19   :  { %38 = dma.hbm_to_vmem [thread:$0]  %s429_s1, 512, %s33_s26, [#allocation6], %s349_s21, %s349_s21, %s350_s22  }
  0x1a   :  { %340 = dma.done.wait [#allocation3], 256  }
  0x1b   :  { %341 = vsyncadd [#allocation3], 4294967040 }
  0x1c   :  { %342 = dma.done.wait [#allocation6], 512  }
  0x1d   :  { %343 = vsyncadd [#allocation6], 4294966784  ;;  %vm60_vm0 = vcmask 261120   ;;  %v52_v0 = vld [vmem:[#allocation5 + $0x18] sm:$0xff]  ;;  %v51_v1 = vld [vmem:[#allocation5 + $0x10] sm:$0xff]  ;;  %s352_s30 = smov [#allocation7]  }
  0x1e   :  { %220 = vmatprep.subr.mxu0 %v52_v0  ;;  %v47_v2 = vld [vmem:[#allocation2] sm:$0xff]  ;;  %v50_v3 = vld [vmem:[#allocation5 + $0x8] sm:$0xff]  ;;  %v49_v4 = vld [vmem:[#allocation5] sm:$0xff]  ;;  %s167_s6 = sshll.u32 %s352_s30, 4  ;;  %s353_s7 = smov 64   ;;  %s168_s6 = int_to_ptr.vmem [resolvable:$true] %s167_s6 }
  0x1f   :  { %221 = vmatpush3.msra.mxu0 %v52_v0  ;;  %228 = vmatprep.mubr.msk.f32.mxu0 %vm60_vm0, %v47_v2  ;;  %v48_v5 = vld [vmem:[#allocation2 + $0x8] sm:$0xff]  ;;  %v211_v6 = vld [vmem:[%s430_s2] ss:$0 sm:$0xff]  ;;  %s354_s8 = smov 96   ;;  %s280_s9 = scalar_lea.vmem %s168_s6, 256 }
  0x20   :  { %222 = vmatprep.subr.mxu0 %v51_v1  ;;  %p281_p10 = scmp.ne.s32.totalorder %s168_s6, %s280_s9  ;;  %p285_p11 = scmp.lt.s32.totalorder %s168_s6, %s168_s6 }
  0x21   :  { %223 = vmatpush3.msra.mxu0 %v51_v1  ;;  %p286_p12 = scmp.lt.s32.totalorder %s280_s9, %s280_s9 }
  0x22   :  { %224 = vmatprep.subr.mxu0 %v50_v3 }
  0x23   :  { %225 = vmatpush3.msra.mxu0 %v50_v3  ;;  %p287_p13 = por %p286_p12, %p285_p11 }
  0x24   :  { %226 = vmatprep.subr.mxu0 %v49_v4 }
  0x25   :  { %227 = vmatpush3.msra.mxu0 %v49_v4  ;;  %p288_p0 = pnand %p287_p13, %p281_p10 }
  0x26   :  { %229 = vmatmul.mubr.msk.f32.vlgmr.msra.gmra.mxu0 %vm60_vm0, %v48_v5 }
  0xe6   :  { %v230_v7 = vpop.f32.mrf.mxu0 }
  0xe7   :  { %v139_v8 = vadd.f32 %v230_v7, %v211_v6 }
  0xe8   :  { %v133_v9 = vpop.f32.mrf.mxu0 }
  0xe9   :  { %143 = vst.msk [vmem:[#allocation7 + $0x8] sm:$0xff] %vm60_vm0, %v139_v8  ;;  %v134_v10 = vadd.f32 %v211_v6, %v133_v9 }
  0xeb   :  { %142 = vst.msk [vmem:[#allocation7] sm:$0xff] %vm60_vm0, %v134_v10  ;;  %154 = vrot.lane.b32.xlu1 %v134_v10, %s353_s7  ;;  %146 = vrot.lane.b32.xlu0 %v134_v10, %s354_s8 }
  0xec   :  { %291 = shalt.err (!%p288_p0)
}
  0xed   :  { %173 = dma.vmem_to_hbm [thread:$0]  %s168_s6, 256, %s431_s3, [#allocation4], %s349_s21, %s349_s21, %s350_s22  }
  0xee   :  { %s355_s11 = smov [#allocation8]   ;;  %s356_s13 = smov [#allocation10]  }
  0xef   :  { %156 = vrot.lane.b32.xlu1 %v139_v8, %s353_s7  ;;  %148 = vrot.lane.b32.xlu0 %v139_v8, %s354_s8  ;;  %s179_s12 = sshll.u32 %s355_s11, 4  ;;  %s191_s14 = sshll.u32 %s356_s13, 4  ;;  %s180_s12 = int_to_ptr.vmem [resolvable:$true] %s179_s12  ;;  %s192_s14 = int_to_ptr.vmem [resolvable:$true] %s191_s14 }
  0xf0   :  { %s300_s3 = scalar_lea.vmem %s180_s12, 256  ;;  %p305_p2 = scmp.lt.s32.totalorder %s180_s12, %s180_s12 }
  0xf1   :  { %p301_p1 = scmp.ne.s32.totalorder %s180_s12, %s300_s3  ;;  %p306_p3 = scmp.lt.s32.totalorder %s300_s3, %s300_s3 }
  0xf3   :  { %p307_p4 = por %p306_p3, %p305_p2 }
  0xf5   :  { %p308_p5 = pnand %p307_p4, %p301_p1 }
 0x15d   :  { %v155_v11 = vpop.permute.xlu1 %154  ;;  %v147_v12 = vpop.permute.xlu0 %146 }
 0x15e   :  { %160 = vst.msk [vmem:[#allocation10] sm:$0xff] %vm60_vm0, %v155_v11  ;;  %152 = vst.msk [vmem:[#allocation8] sm:$0xff] %vm60_vm0, %v147_v12 }
 0x161   :  { %v157_v13 = vpop.permute.xlu1 %156  ;;  %v149_v14 = vpop.permute.xlu0 %148 }
 0x162   :  { %161 = vst.msk [vmem:[#allocation10 + $0x8] sm:$0xff] %vm60_vm0, %v157_v13  ;;  %153 = vst.msk [vmem:[#allocation8 + $0x8] sm:$0xff] %vm60_vm0, %v149_v14 }
 0x163   :  { %311 = shalt.err (!%p308_p5)
}
 0x164   :  { %185 = dma.vmem_to_hbm [thread:$0]  %s180_s12, 256, %s432_s4, [#allocation9], %s349_s21, %s349_s21, %s350_s22  }
 0x165   :  { %s320_s17 = scalar_lea.vmem %s192_s14, 256  ;;  %p325_p7 = scmp.lt.s32.totalorder %s192_s14, %s192_s14 }
 0x166   :  { %p321_p6 = scmp.ne.s32.totalorder %s192_s14, %s320_s17  ;;  %p326_p8 = scmp.lt.s32.totalorder %s320_s17, %s320_s17 }
 0x168   :  { %p327_p9 = por %p326_p8, %p325_p7 }
 0x16a   :  { %p328_p10 = pnand %p327_p9, %p321_p6 }
 0x16c   :  { %331 = shalt.err (!%p328_p10)
}
 0x16d   :  { %197 = dma.vmem_to_hbm [thread:$0]  %s192_s14, 256, %s433_s5, [#allocation9], %s349_s21, %s349_s21, %s350_s22  }
 0x16e   :  { %344 = dma.done.wait [#allocation4], 256  }
 0x16f   :  { %345 = vsyncadd [#allocation4], 4294967040 }
 0x170   :  { %346 = dma.done.wait [#allocation9], 512  }
 0x171   :  { %347 = vsyncadd [#allocation9], 4294966784 }
 0x172   :  { %207 = vsyncpa [#allocation3], 1 }
 0x173   :  { %208 = vsyncpa [#allocation6], 1 }
 0x174   :  { %209 = vsyncpa [#allocation4], 1 }
 0x175   :  { %210 = vsyncpa [#allocation9], 1 }

</bundles_post_ra>
